<compile_context>
chip_gen: v6e
topology: v6e:2x2x1
jax: 0.10.0
libtpu: 0.0.40
codegen_flags: <defaults>
</compile_context>

<pallas_src>
import jax
import jax.numpy as jnp
from jax import lax
from jax.experimental import pallas as pl
from jax.experimental.pallas import tpu as pltpu


def _crossnet_vector_kernel(x_ref, w_ref, b_ref, o_ref):
    # x_ref: (tile_b, Fp)   w_ref, b_ref: (L, Fp)   o_ref: (tile_b, Fp)
    x0 = x_ref[...].astype(jnp.float32)
    w = w_ref[...].astype(jnp.float32)
    b = b_ref[...].astype(jnp.float32)
    xl = x0
    for i in range(w_ref.shape[0]):           # tiny static L -> unrolled
        w_i = w[i:i + 1, :]                                  # (1, Fp)
        b_i = b[i:i + 1, :]                                  # (1, Fp)
        s = jnp.sum(xl * w_i, axis=1, keepdims=True)         # (tile_b, 1) XLU reduce
        xl = x0 * s + b_i + xl
    o_ref[...] = xl.astype(o_ref.dtype)


def _crossnet_matrix_kernel(x_ref, w_ref, b_ref, o_ref):
    # x_ref: (tile_b, Fp)   w_ref: (L, Fp, Fp) = W_i^T (pre-transposed in wrapper)
    # b_ref: (L, Fp)        o_ref: (tile_b, Fp)
    x0 = x_ref[...].astype(jnp.float32)
    b = b_ref[...].astype(jnp.float32)
    xl = x0
    # Feed the MXU in the weights' native dtype (bf16 stays bf16, f32 stays f32);
    # accumulate in f32, residual accumulator xl stays f32.
    mm_dtype = w_ref.dtype
    for i in range(w_ref.shape[0]):
        # xl_w[n, j] = sum_k xl[n, k] * W_i[j, k]  (standard (M,K)x(K,N) on W_i^T)
        xl_w = jnp.dot(xl.astype(mm_dtype), w_ref[i],
                       preferred_element_type=jnp.float32)   # (tile_b, Fp)
        xl = x0 * (xl_w + b[i:i + 1, :]) + xl
    o_ref[...] = xl.astype(o_ref.dtype)


def crossnet(x, kernels, bias, *, parameterization="vector", tile_b=None):
    """CrossNet forward.

    x:       (B, F) float
    kernels: (L, F, 1) for 'vector', (L, F, F) for 'matrix'
    bias:    (L, F, 1)
    returns: (B, F)
    """
    B, F = x.shape
    L = kernels.shape[0]
    itemsize = jnp.dtype(x.dtype).itemsize
    row_align = {4: 8, 2: 16, 1: 32}.get(itemsize, 8)   # sublane packing per dtype

    # ---- lane padding: F -> multiple of 128 (zero lanes stay zero end-to-end).
    F_pad = ((F + 127) // 128) * 128
    pad_f = F_pad - F

    x_p = jnp.pad(x, ((0, 0), (0, pad_f))) if pad_f else x
    bias2d = bias.reshape(L, F)
    b_p = jnp.pad(bias2d, ((0, 0), (0, pad_f))) if pad_f else bias2d

    if parameterization == "vector":
        kernel_fn = _crossnet_vector_kernel
        w = kernels.reshape(L, F)
        w_p = jnp.pad(w, ((0, 0), (0, pad_f))) if pad_f else w
        w_block = (L, F_pad)
        w_map = lambda i: (0, 0)
        weight_bytes = L * F_pad * itemsize
    elif parameterization == "matrix":
        kernel_fn = _crossnet_matrix_kernel
        # One-time HBM-side transpose -> kernel does plain xl @ W_i^T.
        w = jnp.swapaxes(kernels, 1, 2)
        w_p = jnp.pad(w, ((0, 0), (0, pad_f), (0, pad_f))) if pad_f else w
        w_block = (L, F_pad, F_pad)
        w_map = lambda i: (0, 0, 0)
        weight_bytes = L * F_pad * F_pad * itemsize
    else:
        raise ValueError("parameterization should be 'vector' or 'matrix'")

    # ---- batch tile: size double-buffered in/out slabs + ~4 f32 temporaries
    # to ~12 MiB so all generations' scoped-VMEM defaults are respected.
    act_budget = 12 << 20
    per_row = (2 * 2 * itemsize + 4 * 4) * F_pad
    if tile_b is None:
        tile_b = min(1024, max(row_align, act_budget // per_row))
    tile_b = max(row_align, (int(tile_b) // row_align) * row_align)
    b_ceil = ((B + row_align - 1) // row_align) * row_align
    tile_b = min(tile_b, b_ceil)

    B_pad = ((B + tile_b - 1) // tile_b) * tile_b
    if B_pad != B:
        x_p = jnp.pad(x_p, ((0, B_pad - B), (0, 0)))
    grid = (B_pad // tile_b,)

    # Grid-invariant weights / bias: single buffer (index_map is constant,
    # a second pipeline buffer would be pure VMEM waste).
    w_spec = pl.BlockSpec(w_block, w_map, pipeline_mode=pl.Buffered(1))
    b_spec = pl.BlockSpec((L, F_pad), lambda i: (0, 0), pipeline_mode=pl.Buffered(1))

    # Raise the scoped-VMEM limit only when the estimate actually needs it.
    est = (weight_bytes + L * F_pad * itemsize
           + 2 * 2 * tile_b * F_pad * itemsize + 4 * tile_b * F_pad * 4)
    cp = dict(dimension_semantics=("parallel",))   # batch tiles shard across megacore TCs
    if est > (14 << 20):
        cp["vmem_limit_bytes"] = int(min(48 << 20, est + est // 4 + (2 << 20)))
    # TODO(synk): for very large matrix weights (L*F_pad*F_pad*dtype beyond the
    # VMEM headroom, e.g. L>=4, F>=1536 on v7x) switch the weight input to
    # memory_space=pl.ANY and manually double-buffer a (2, F, F) VMEM scratch
    # with pltpu.make_async_copy, prefetching W_{i+1} under layer i's matmul.

    out = pl.pallas_call(
        kernel_fn,
        out_shape=jax.ShapeDtypeStruct((B_pad, F_pad), x.dtype),
        grid_spec=pltpu.PrefetchScalarGridSpec(
            num_scalar_prefetch=0,
            grid=grid,
            in_specs=[
                pl.BlockSpec((tile_b, F_pad), lambda i: (i, 0)),  # activations (tiled)
                w_spec,                                           # weights (resident, 1-buf)
                b_spec,                                           # bias    (resident, 1-buf)
            ],
            out_specs=pl.BlockSpec((tile_b, F_pad), lambda i: (i, 0)),
        ),
        compiler_params=pltpu.CompilerParams(**cp),
    )(x_p, w_p, b_p)

    if B_pad != B or pad_f:
        out = out[:B, :F]
    return out


def _reference(x, kernels, bias, parameterization="vector"):
    """Pure-JAX transliteration of the PyTorch CrossNet.forward."""
    x0 = x[:, :, None]                    # (B, F, 1)
    xl = x0
    hi = lax.Precision.HIGHEST
    for i in range(kernels.shape[0]):
        if parameterization == "vector":
            xl_w = jnp.tensordot(xl, kernels[i], axes=([1], [0]), precision=hi)  # (B, 1, 1)
            dot_ = jnp.matmul(x0, xl_w, precision=hi)                            # (B, F, 1)
            xl = dot_ + bias[i] + xl
        else:
            xl_w = jnp.matmul(kernels[i], xl, precision=hi)                      # (B, F, 1)
            dot_ = xl_w + bias[i]
            xl = x0 * dot_ + xl
    return jnp.squeeze(xl, axis=2)


if __name__ == "__main__":
    key = jax.random.PRNGKey(0)
    # Deliberately non-aligned small shapes: exercises both batch and lane padding.
    B, F, L = 10, 40, 2
    k_x, k_wv, k_wm, k_b = jax.random.split(key, 4)

    x = jax.random.normal(k_x, (B, F), dtype=jnp.float32)
    # xavier_normal-ish kernels; nonzero bias to exercise the full path
    kern_v = jax.random.normal(k_wv, (L, F, 1), dtype=jnp.float32) * (2.0 / (F + 1)) ** 0.5
    kern_m = jax.random.normal(k_wm, (L, F, F), dtype=jnp.float32) * (1.0 / F) ** 0.5
    bias_p = jax.random.normal(k_b, (L, F, 1), dtype=jnp.float32) * 0.1

    # vector parameterization (module default)
    out_v = jax.block_until_ready(crossnet(x, kern_v, bias_p, parameterization="vector"))
    ref_v = _reference(x, kern_v, bias_p, "vector")
    assert out_v.shape == (B, F), out_v.shape
    assert jnp.allclose(out_v, ref_v, atol=2e-3, rtol=1e-3), "vector mismatch vs reference"

    # matrix parameterization (f32 parity path)
    out_m = jax.block_until_ready(crossnet(x, kern_m, bias_p, parameterization="matrix"))
    ref_m = _reference(x, kern_m, bias_p, "matrix")
    assert out_m.shape == (B, F), out_m.shape
    assert jnp.allclose(out_m, ref_m, atol=2e-3, rtol=1e-3), "matrix mismatch vs reference"

    # bf16 weights/activations take the native-bf16 MXU path (f32 accumulate).
    out_m16 = jax.block_until_ready(
        crossnet(x.astype(jnp.bfloat16), kern_m.astype(jnp.bfloat16),
                 bias_p.astype(jnp.bfloat16), parameterization="matrix"))
    assert out_m16.shape == (B, F), out_m16.shape
    assert bool(jnp.all(jnp.isfinite(out_m16.astype(jnp.float32)))), "bf16 path produced non-finite"

    print("KERNEL_OK")
</pallas_src>

<mosaic_0001>
module attributes {stable_mosaic.version = 11 : i64} {
  func.func @_crossnet_vector_kernel(%arg0: i32, %arg1: memref<16x128xf32, #tpu.memory_space<vmem>>, %arg2: memref<2x128xf32, #tpu.memory_space<vmem>>, %arg3: memref<2x128xf32, #tpu.memory_space<vmem>>, %arg4: memref<16x128xf32, #tpu.memory_space<vmem>>) attributes {dimension_semantics = [#tpu.dimension_semantics<parallel>], iteration_bounds = array<i64: 1>, scalar_prefetch = 0 : i64, scratch_operands = 0 : i64, tpu.core_type = #tpu.core_type<tc>, window_params = [{transform_indices = @transform_0, window_bounds = array<i64: 16, 128>}, {pipeline_mode = #tpu.pipeline_mode<synchronous>, transform_indices = @transform_1, window_bounds = array<i64: 2, 128>}, {pipeline_mode = #tpu.pipeline_mode<synchronous>, transform_indices = @transform_2, window_bounds = array<i64: 2, 128>}, {transform_indices = @transform_3, window_bounds = array<i64: 16, 128>}]} {
    %c0 = arith.constant 0 : index
    %c0_0 = arith.constant 0 : index
    %0 = vector.load %arg1[%c0, %c0_0] : memref<16x128xf32, #tpu.memory_space<vmem>>, vector<16x128xf32>
    %c0_1 = arith.constant 0 : index
    %c0_2 = arith.constant 0 : index
    %1 = vector.load %arg2[%c0_1, %c0_2] : memref<2x128xf32, #tpu.memory_space<vmem>>, vector<2x128xf32>
    %c0_3 = arith.constant 0 : index
    %c0_4 = arith.constant 0 : index
    %2 = vector.load %arg3[%c0_3, %c0_4] : memref<2x128xf32, #tpu.memory_space<vmem>>, vector<2x128xf32>
    %3 = vector.extract_strided_slice %1 {offsets = [0, 0], sizes = [1, 128], strides = [1, 1]} : vector<2x128xf32> to vector<1x128xf32>
    %4 = vector.extract_strided_slice %2 {offsets = [0, 0], sizes = [1, 128], strides = [1, 1]} : vector<2x128xf32> to vector<1x128xf32>
    %5 = vector.broadcast %3 : vector<1x128xf32> to vector<16x128xf32>
    %6 = arith.mulf %0, %5 : vector<16x128xf32>
    %cst = arith.constant dense<0.000000e+00> : vector<16xf32>
    %7 = vector.multi_reduction <add>, %6, %cst [1] : vector<16x128xf32> to vector<16xf32>
    %8 = vector.shape_cast %7 : vector<16xf32> to vector<16x1xf32>
    %9 = vector.broadcast %8 : vector<16x1xf32> to vector<16x128xf32>
    %10 = arith.mulf %0, %9 : vector<16x128xf32>
    %11 = vector.broadcast %4 : vector<1x128xf32> to vector<16x128xf32>
    %12 = arith.addf %10, %11 : vector<16x128xf32>
    %13 = arith.addf %12, %0 : vector<16x128xf32>
    %14 = vector.extract_strided_slice %1 {offsets = [1, 0], sizes = [1, 128], strides = [1, 1]} : vector<2x128xf32> to vector<1x128xf32>
    %15 = vector.extract_strided_slice %2 {offsets = [1, 0], sizes = [1, 128], strides = [1, 1]} : vector<2x128xf32> to vector<1x128xf32>
    %16 = vector.broadcast %14 : vector<1x128xf32> to vector<16x128xf32>
    %17 = arith.mulf %13, %16 : vector<16x128xf32>
    %cst_5 = arith.constant dense<0.000000e+00> : vector<16xf32>
    %18 = vector.multi_reduction <add>, %17, %cst_5 [1] : vector<16x128xf32> to vector<16xf32>
    %19 = vector.shape_cast %18 : vector<16xf32> to vector<16x1xf32>
    %20 = vector.broadcast %19 : vector<16x1xf32> to vector<16x128xf32>
    %21 = arith.mulf %0, %20 : vector<16x128xf32>
    %22 = vector.broadcast %15 : vector<1x128xf32> to vector<16x128xf32>
    %23 = arith.addf %21, %22 : vector<16x128xf32>
    %24 = arith.addf %23, %13 : vector<16x128xf32>
    %c0_6 = arith.constant 0 : index
    %c0_7 = arith.constant 0 : index
    %25 = vector.load %arg4[%c0_6, %c0_7] : memref<16x128xf32, #tpu.memory_space<vmem>>, vector<16x128xf32>
    tpu.vector_store %arg4[%c0_6, %c0_7], %24 {strides = array<i32>} : memref<16x128xf32, #tpu.memory_space<vmem>>, vector<16x128xf32>,
    return
  }
  func.func @transform_0(%arg0: i32) -> (i32, i32) {
    %c0_i32 = arith.constant 0 : i32
    %c0_i32_0 = arith.constant 0 : i32
    return %arg0, %c0_i32 : i32, i32
  }
  func.func @transform_1(%arg0: i32) -> (i32, i32) {
    %c0_i32 = arith.constant 0 : i32
    %c0_i32_0 = arith.constant 0 : i32
    %c0_i32_1 = arith.constant 0 : i32
    return %c0_i32, %c0_i32_0 : i32, i32
  }
  func.func @transform_2(%arg0: i32) -> (i32, i32) {
    %c0_i32 = arith.constant 0 : i32
    %c0_i32_0 = arith.constant 0 : i32
    %c0_i32_1 = arith.constant 0 : i32
    return %c0_i32, %c0_i32_0 : i32, i32
  }
  func.func @transform_3(%arg0: i32) -> (i32, i32) {
    %c0_i32 = arith.constant 0 : i32
    %c0_i32_0 = arith.constant 0 : i32
    return %arg0, %c0_i32 : i32, i32
  }
}

</mosaic_0001>

<bundles_post_ra>
// kernel: tpu_custom_call.1
= control target key start
LH: loop header
LB: loop body
LE: loop exit
PB: predicated region body
PF: predicated region fallthrough
CT: control target
= control target key end

     0   :  { %8 = vsyncpa [#allocation3], 0  ;;  %s219_s0 = inlined_call_operand.hbm [shape: f32[16,128], index: 0, kind: input, shape index: {}]   ;;  %s220_s1 = inlined_call_operand.hbm [shape: f32[2,128], index: 1, kind: input, shape index: {}]   ;;  %s221_s2 = inlined_call_operand.vmem [shape: f32[2,128], index: 2, kind: input, shape index: {}]   ;;  %s222_s3 = inlined_call_operand.hbm [shape: f32[16,128], index: 3, kind: output, shape index: {}]  }
   0x1   :  { %9 = vsyncpa [#allocation6], 0 }
   0x2   :  { %10 = vsyncpa [#allocation4], 0  ;;  %s176_s12 = smov [#allocation2]  }
   0x3   :  { %s16_s13 = sshll.u32 %s176_s12, 4  ;;  %s17_s13 = int_to_ptr.vmem [resolvable:$true] %s16_s13 }
   0x4   :  { %s118_s14 = scalar_lea.vmem %s17_s13, 256  ;;  %p123_p1 = scmp.lt.s32.totalorder %s17_s13, %s17_s13 }
   0x5   :  { %p119_p0 = scmp.ne.s32.totalorder %s17_s13, %s118_s14  ;;  %p124_p2 = scmp.lt.s32.totalorder %s118_s14, %s118_s14 }
   0x7   :  { %p125_p3 = por %p124_p2, %p123_p1 }
   0x9   :  { %p126_p4 = pnand %p125_p3, %p119_p0 }
   0xb   :  { %129 = shalt.err (!%p126_p4)
}
   0xc   :  { %s177_s15 = smov 128   ;;  %s178_s16 = smov 8  }
   0xd   :  { %22 = dma.hbm_to_vmem [thread:$0]  %s219_s0, 256, %s17_s13, [#allocation3], %s177_s15, %s177_s15, %s178_s16  }
   0xe   :  { %s179_s19 = smov [#allocation5]  }
   0xf   :  { %s29_s20 = sshll.u32 %s179_s19, 4  ;;  %s30_s20 = int_to_ptr.vmem [resolvable:$true] %s29_s20 }
  0x10   :  { %s138_s21 = scalar_lea.vmem %s30_s20, 32  ;;  %p143_p6 = scmp.lt.s32.totalorder %s30_s20, %s30_s20 }
  0x11   :  { %p139_p5 = scmp.ne.s32.totalorder %s30_s20, %s138_s21  ;;  %p144_p7 = scmp.lt.s32.totalorder %s138_s21, %s138_s21 }
  0x13   :  { %p145_p8 = por %p144_p7, %p143_p6 }
  0x15   :  { %p146_p9 = pnand %p145_p8, %p139_p5 }
  0x17   :  { %149 = shalt.err (!%p146_p9)
}
  0x18   :  { %32 = dma.hbm_to_vmem [thread:$0]  %s220_s1, 32, %s30_s20, [#allocation6]  }
  0x19   :  { %170 = dma.done.wait [#allocation3], 256  }
  0x1a   :  { %171 = vsyncadd [#allocation3], 4294967040 }
  0x1b   :  { %172 = dma.done.wait [#allocation6], 32  }
  0x1c   :  { %173 = vsyncadd [#allocation6], 4294967264  ;;  %v45_v0 = vlaneseq  ;;  %v41_v3 = vld [vmem:[#allocation2] sm:$0xff]  ;;  %v43_v4 = vld [vmem:[#allocation5] sm:$0x3]  ;;  %s180_s1 = smov [#allocation7]  }
  0x1d   :  { %v42_v6 = vld [vmem:[#allocation2 + $0x8] sm:$0xff]  ;;  %v44_v11 = vld [vmem:[%s221_s2] sm:$0x3]  ;;  %s92_s2 = sshll.u32 %s180_s1, 4  ;;  %s93_s2 = int_to_ptr.vmem [resolvable:$true] %s92_s2 }
  0x1e   :  { %v46_v1 = vshrl.u32 %v45_v0, 7  ;;  %s150_s25 = scalar_lea.vmem %s93_s2, 256  ;;  %p155_p11 = scmp.lt.s32.totalorder %s93_s2, %s93_s2 }
  0x1f   :  { %p151_p10 = scmp.ne.s32.totalorder %s93_s2, %s150_s25  ;;  %p156_p12 = scmp.lt.s32.totalorder %s150_s25, %s150_s25 }
  0x20   :  { %v47_v2 = vsub.s32 0, %v46_v1  ;;  %v67_v9 = vsub.s32 1, %v46_v1 }
  0x21   :  { %p157_p13 = por %p156_p12, %p155_p11 }
  0x22   :  { %v48_v5 = vrot.slane %v43_v4, %v47_v2  ;;  %v68_v10 = vrot.slane %v43_v4, %v67_v9  ;;  %v80_v12 = vrot.slane %v44_v11, %v67_v9  ;;  %v60_v13 = vrot.slane %v44_v11, %v47_v2 }
  0x23   :  { %p158_p0 = pnand %p157_p13, %p151_p10 }
  0x24   :  { %v49_v7 = vmul.f32 %v48_v5, %v41_v3  ;;  %v50_v8 = vmul.f32 %v48_v5, %v42_v6 }
  0x26   :  { %51 = vadd.xlane.f32.xlu0 %v49_v7 }
  0x2a   :  { %53 = vadd.xlane.f32.xlu0 %v50_v8 }
  0xaf   :  { %v52_v14 = vpop.xlane.xlu0 %51 }
  0xb0   :  { %v55_v15 = vmul.f32 %v52_v14, %v41_v3 }
  0xb2   :  { %v61_v16 = vadd.f32 %v60_v13, %v55_v15 }
  0xb3   :  { %v54_v17 = vpop.xlane.xlu0 %53 }
  0xb4   :  { %v56_v18 = vmul.f32 %v54_v17, %v42_v6  ;;  %v63_v19 = vadd.f32 %v61_v16, %v41_v3 }
  0xb6   :  { %v62_v20 = vadd.f32 %v60_v13, %v56_v18  ;;  %v69_v21 = vmul.f32 %v68_v10, %v63_v19 }
  0xb8   :  { %71 = vadd.xlane.f32.xlu1 %v69_v21  ;;  %v64_v22 = vadd.f32 %v62_v20, %v42_v6 }
  0xba   :  { %v70_v23 = vmul.f32 %v68_v10, %v64_v22 }
  0xbc   :  { %73 = vadd.xlane.f32.xlu1 %v70_v23 }
 0x141   :  { %v72_v24 = vpop.xlane.xlu1 %71 }
 0x142   :  { %v75_v25 = vmul.f32 %v72_v24, %v41_v3 }
 0x144   :  { %v81_v26 = vadd.f32 %v80_v12, %v75_v25 }
 0x145   :  { %v74_v27 = vpop.xlane.xlu1 %73 }
 0x146   :  { %v83_v28 = vadd.f32 %v81_v26, %v63_v19  ;;  %v76_v29 = vmul.f32 %v74_v27, %v42_v6 }
 0x148   :  { %85 = vst [vmem:[#allocation7] sm:$0xff] %v83_v28  ;;  %v82_v30 = vadd.f32 %v80_v12, %v76_v29 }
 0x14a   :  { %v84_v31 = vadd.f32 %v82_v30, %v64_v22 }
 0x14c   :  { %86 = vst [vmem:[#allocation7 + $0x8] sm:$0xff] %v84_v31 }
 0x14d   :  { %161 = shalt.err (!%p158_p0)
}
 0x14e   :  { %98 = dma.vmem_to_hbm [thread:$0]  %s93_s2, 256, %s222_s3, [#allocation4], %s177_s15, %s177_s15, %s178_s16  }
 0x14f   :  { %174 = dma.done.wait [#allocation4], 256  }
 0x150   :  { %175 = vsyncadd [#allocation4], 4294967040 }
 0x151   :  { %102 = vsyncpa [#allocation3], 1 }
 0x152   :  { %103 = vsyncpa [#allocation6], 1 }
 0x153   :  { %104 = vsyncpa [#allocation4], 1 }

</bundles_post_ra>
